<compile_context>
chip_gen: v7x
topology: tpu7x:2x2x1
jax: 0.10.0
libtpu: 0.0.40
codegen_flags: <defaults>
</compile_context>

<pallas_src>
import functools
import math

import jax
import jax.numpy as jnp
from jax import lax
from jax.experimental import pallas as pl
from jax.experimental.pallas import tpu as pltpu


# ------------------------------ kernel helpers ------------------------------ #

def _tap_plane(x, row, col, sy, sx, h, w):
    """Shift a (C, H*W) lane-flattened plane by (sy, sx) with zero boundary fill.

    A spatial shift is a static lane roll by sy*w + sx (XLU, off the VALU
    critical path) plus an iota-derived edge mask for rows/cols that fall
    outside the image (this implements the implicit zero padding in-kernel).
    """
    hw = h * w
    s = sy * w + sx
    shifted = x if s % hw == 0 else pltpu.roll(x, shift=(-s) % hw, axis=1)
    conds = []
    if sy > 0:
        conds.append(row < h - sy)
    if sy < 0:
        conds.append(row >= -sy)
    if sx > 0:
        conds.append(col < w - sx)
    if sx < 0:
        conds.append(col >= -sx)
    if not conds:
        return shifted
    ok = conds[0]
    for cond in conds[1:]:
        ok = jnp.logical_and(ok, cond)
    return jnp.where(ok, shifted, 0.0)


# ----------------------------- Pallas kernels ------------------------------- #

def _relu_conv1x1_bn_kernel(x_ref, w_ref, b_ref, o_ref, *, c):
    # x_ref/o_ref: (C, H*W) f32 VMEM (batch dim squeezed by the BlockSpec)
    # w_ref: (C*C,) f32 SMEM, row-major [co, ci], BN scale pre-folded
    # b_ref: (C,)   f32 SMEM, folded BN shift
    x = jnp.maximum(x_ref[...], 0.0)                      # one ReLU for all co
    for co in range(c):
        acc = x[0:1, :] * w_ref[co * c]
        for ci in range(1, c):
            acc = acc + x[ci:ci + 1, :] * w_ref[co * c + ci]
        o_ref[co:co + 1, :] = acc + b_ref[co]


def _relu_conv3x3_bn_kernel(x_ref, w_ref, b_ref, o_ref, *, c, h, w):
    # x_ref/o_ref: (C, H*W) f32 VMEM
    # w_ref: (C*C*9,) f32 SMEM, row-major [co, ci, ky, kx], BN scale pre-folded
    # b_ref: (C,)     f32 SMEM, folded BN shift
    hw = h * w
    x = jnp.maximum(x_ref[...], 0.0)        # ReLU(0) == 0 == implicit zero pad
    lane = lax.broadcasted_iota(jnp.int32, (1, hw), 1)
    row, col = lane // w, lane % w
    accs = [None] * c
    for ky in range(3):
        for kx in range(3):
            tap = _tap_plane(x, row, col, ky - 1, kx - 1, h, w)   # (C, H*W)
            for ci in range(c):
                t = tap[ci:ci + 1, :]
                for co in range(c):
                    wsc = w_ref[((co * c + ci) * 3 + ky) * 3 + kx]
                    accs[co] = t * wsc if accs[co] is None else accs[co] + t * wsc
    for co in range(c):
        o_ref[co:co + 1, :] = accs[co] + b_ref[co]


def _avgpool3x3_kernel(x_ref, o_ref, *, c, h, w):
    # count_include_pad=False: sum of in-bounds neighbours / their count.
    hw = h * w
    x = x_ref[...]                                        # (C, H*W) f32
    lane = lax.broadcasted_iota(jnp.int32, (1, hw), 1)
    row, col = lane // w, lane % w
    acc = x                                               # centre tap
    for ky in range(3):
        for kx in range(3):
            if ky == 1 and kx == 1:
                continue
            acc = acc + _tap_plane(x, row, col, ky - 1, kx - 1, h, w)
    edge_h = jnp.logical_or(row == 0, row == h - 1)
    edge_w = jnp.logical_or(col == 0, col == w - 1)
    inv = jnp.where(jnp.logical_and(edge_h, edge_w), 1.0 / 4.0,
                    jnp.where(jnp.logical_or(edge_h, edge_w), 1.0 / 6.0, 1.0 / 9.0))
    o_ref[...] = acc * inv


# --------------------------- pallas_call wrappers ---------------------------- #

_SMEM_SPEC = pl.BlockSpec(memory_space=pltpu.MemorySpace.SMEM)


def _plane_spec(c, hw):
    # One image per grid step, batch dim squeezed; lane axis = H*W (lane-dense).
    return pl.BlockSpec((None, c, hw), lambda i: (i, 0, 0))


def _params_1axis():
    return pltpu.CompilerParams(dimension_semantics=("parallel",))


def relu_conv1x1_bn(x3, w_flat, shift):
    n, c, hw = x3.shape
    return pl.pallas_call(
        functools.partial(_relu_conv1x1_bn_kernel, c=c),
        grid=(n,),
        in_specs=[_plane_spec(c, hw), _SMEM_SPEC, _SMEM_SPEC],
        out_specs=_plane_spec(c, hw),
        out_shape=jax.ShapeDtypeStruct((n, c, hw), x3.dtype),
        compiler_params=_params_1axis(),
    )(x3, w_flat, shift)


def relu_conv3x3_bn(x3, w_flat, shift, *, h, w):
    n, c, hw = x3.shape
    return pl.pallas_call(
        functools.partial(_relu_conv3x3_bn_kernel, c=c, h=h, w=w),
        grid=(n,),
        in_specs=[_plane_spec(c, hw), _SMEM_SPEC, _SMEM_SPEC],
        out_specs=_plane_spec(c, hw),
        out_shape=jax.ShapeDtypeStruct((n, c, hw), x3.dtype),
        compiler_params=_params_1axis(),
    )(x3, w_flat, shift)


def avgpool3x3(x3, *, h, w):
    n, c, hw = x3.shape
    return pl.pallas_call(
        functools.partial(_avgpool3x3_kernel, c=c, h=h, w=w),
        grid=(n,),
        in_specs=[_plane_spec(c, hw)],
        out_specs=_plane_spec(c, hw),
        out_shape=jax.ShapeDtypeStruct((n, c, hw), x3.dtype),
        compiler_params=_params_1axis(),
    )(x3)


# ------------------------------ Edge forward --------------------------------- #

def edge_forward(x_nchw, id_op, params):
    """NASBench-201 Edge.forward: apply op `id_op` to an NCHW activation."""
    op = int(id_op)                                       # matches torch int(id_op)
    if op == 0:                                           # Zero
        return jnp.zeros_like(x_nchw)
    if op == 1:                                           # Skip
        return x_nchw
    n, c, h, w = x_nchw.shape
    x3 = x_nchw.reshape(n, c, h * w)                      # free reshape, NCHW kept
    if op == 2:                                           # ReLU-Conv1x1-BN
        y3 = relu_conv1x1_bn(x3, params["w1"], params["shift1"])
    elif op == 3:                                         # ReLU-Conv3x3-BN
        y3 = relu_conv3x3_bn(x3, params["w3"], params["shift3"], h=h, w=w)
    elif op == 4:                                         # AvgPool3x3
        y3 = avgpool3x3(x3, h=h, w=w)
    else:
        raise ValueError(f"unknown op id {op}")
    return y3.reshape(n, c, h, w)


def init_edge_params(key, c, bn_eps=1e-5):
    """Deterministic synthetic parameters for one Edge (conv weights + folded BN)."""
    ks = jax.random.split(key, 10)

    def bn_fold(kg, kb, km, kv):
        gamma = 1.0 + 0.1 * jax.random.normal(kg, (c,), jnp.float32)
        beta = 0.1 * jax.random.normal(kb, (c,), jnp.float32)
        rmean = 0.05 * jax.random.normal(km, (c,), jnp.float32)
        rvar = 1.0 + 0.1 * jax.random.uniform(kv, (c,), jnp.float32)
        scale = gamma / jnp.sqrt(rvar + bn_eps)
        shift = beta - rmean * scale
        return scale, shift

    # Conv1x1: torch weight (c_out, c_in, 1, 1); fold BN scale into rows (co).
    w1_t = jax.random.normal(ks[0], (c, c, 1, 1), jnp.float32) / math.sqrt(c)
    scale1, shift1 = bn_fold(ks[1], ks[2], ks[3], ks[4])
    w1_oi = w1_t[:, :, 0, 0]                               # (co, ci)
    w1_fold = (w1_oi * scale1[:, None]).reshape(c * c)

    # Conv3x3: torch weight (c_out, c_in, 3, 3); fold BN scale into co.
    w3_t = jax.random.normal(ks[5], (c, c, 3, 3), jnp.float32) / math.sqrt(9 * c)
    scale3, shift3 = bn_fold(ks[6], ks[7], ks[8], ks[9])
    w3_fold = (w3_t * scale3[:, None, None, None]).reshape(c * c * 9)

    return {
        "w1": w1_fold, "shift1": shift1,
        "w3": w3_fold, "shift3": shift3,
        # unfolded f32 copies only for the reference checks in __main__
        "w1_oi": w1_oi, "scale1": scale1,
        "w3_oihw": w3_t, "scale3": scale3,
    }


# ---------------------------------- main ------------------------------------- #

if __name__ == "__main__":
    N, C, H, W = 2, 4, 16, 16

    key = jax.random.PRNGKey(0)
    kx, kp = jax.random.split(key)
    x = jax.random.normal(kx, (N, C, H, W), jnp.float32)       # NCHW like PyTorch
    params = init_edge_params(kp, C)

    outs = {op: jax.block_until_ready(edge_forward(x, op, params))
            for op in range(5)}

    for op, y in outs.items():
        assert y.shape == (N, C, H, W) and y.dtype == jnp.float32, op

    # Zero / Skip: exact.
    assert bool(jnp.all(outs[0] == 0.0))
    assert bool(jnp.all(outs[1] == x))

    xr = jnp.maximum(x, 0.0)

    # Conv1x1 reference (full f32 precision).
    ref2 = jnp.einsum("oi,nihw->nohw", params["w1_oi"], xr,
                      precision=lax.Precision.HIGHEST)
    ref2 = (ref2 * params["scale1"][None, :, None, None]
            + params["shift1"][None, :, None, None])
    assert bool(jnp.allclose(outs[2], ref2, atol=1e-4, rtol=1e-4)), "conv1x1 mismatch"

    # Conv3x3 reference (full f32 precision).
    ref3 = lax.conv_general_dilated(xr, params["w3_oihw"], (1, 1), "SAME",
                                    dimension_numbers=("NCHW", "OIHW", "NCHW"),
                                    precision=lax.Precision.HIGHEST)
    ref3 = (ref3 * params["scale3"][None, :, None, None]
            + params["shift3"][None, :, None, None])
    assert bool(jnp.allclose(outs[3], ref3, atol=1e-4, rtol=1e-4)), "conv3x3 mismatch"

    # AvgPool3x3 (count_include_pad=False) reference.
    xp = jnp.pad(x, ((0, 0), (0, 0), (1, 1), (1, 1)))
    s = sum(xp[:, :, dy:dy + H, dx:dx + W] for dy in range(3) for dx in range(3))
    ones = jnp.pad(jnp.ones((1, 1, H, W), jnp.float32),
                   ((0, 0), (0, 0), (1, 1), (1, 1)))
    cnt = sum(ones[:, :, dy:dy + H, dx:dx + W] for dy in range(3) for dx in range(3))
    ref4 = s / cnt
    assert bool(jnp.allclose(outs[4], ref4, atol=1e-5, rtol=1e-5)), "avgpool mismatch"

    print("KERNEL_OK")
</pallas_src>

<mosaic_0001>
module attributes {stable_mosaic.version = 11 : i64} {
  func.func @_relu_conv1x1_bn_kernel(%arg0: i32, %arg1: memref<1x4x256xf32, #tpu.memory_space<vmem>>, %arg2: memref<16xf32, #tpu.memory_space<smem>>, %arg3: memref<4xf32, #tpu.memory_space<smem>>, %arg4: memref<1x4x256xf32, #tpu.memory_space<vmem>>) attributes {dimension_semantics = [#tpu.dimension_semantics<parallel>], iteration_bounds = array<i64: 2>, scalar_prefetch = 0 : i64, scratch_operands = 0 : i64, tpu.core_type = #tpu.core_type<tc>, window_params = [{transform_indices = @transform_0, window_bounds = array<i64: 1, 4, 256>}, {transform_indices = @transform_1, window_bounds = array<i64: 16>}, {transform_indices = @transform_2, window_bounds = array<i64: 4>}, {transform_indices = @transform_3, window_bounds = array<i64: 1, 4, 256>}]} {
    %c0 = arith.constant 0 : index
    %c0_0 = arith.constant 0 : index
    %c0_1 = arith.constant 0 : index
    %0 = vector.load %arg1[%c0, %c0_0, %c0_1] : memref<1x4x256xf32, #tpu.memory_space<vmem>>, vector<1x4x256xf32>
    %1 = vector.shape_cast %0 : vector<1x4x256xf32> to vector<4x256xf32>
    %cst = arith.constant 0.000000e+00 : f32
    %2 = vector.broadcast %cst : f32 to vector<4x256xf32>
    %3 = arith.maximumf %1, %2 : vector<4x256xf32>
    %4 = vector.extract_strided_slice %3 {offsets = [0, 0], sizes = [1, 256], strides = [1, 1]} : vector<4x256xf32> to vector<1x256xf32>
    %c0_2 = arith.constant 0 : index
    %5 = memref.load %arg2[%c0_2] : memref<16xf32, #tpu.memory_space<smem>>
    %6 = vector.broadcast %5 : f32 to vector<1x256xf32>
    %7 = arith.mulf %4, %6 : vector<1x256xf32>
    %8 = vector.extract_strided_slice %3 {offsets = [1, 0], sizes = [1, 256], strides = [1, 1]} : vector<4x256xf32> to vector<1x256xf32>
    %c1 = arith.constant 1 : index
    %9 = memref.load %arg2[%c1] : memref<16xf32, #tpu.memory_space<smem>>
    %10 = vector.broadcast %9 : f32 to vector<1x256xf32>
    %11 = arith.mulf %8, %10 : vector<1x256xf32>
    %12 = arith.addf %7, %11 : vector<1x256xf32>
    %13 = vector.extract_strided_slice %3 {offsets = [2, 0], sizes = [1, 256], strides = [1, 1]} : vector<4x256xf32> to vector<1x256xf32>
    %c2 = arith.constant 2 : index
    %14 = memref.load %arg2[%c2] : memref<16xf32, #tpu.memory_space<smem>>
    %15 = vector.broadcast %14 : f32 to vector<1x256xf32>
    %16 = arith.mulf %13, %15 : vector<1x256xf32>
    %17 = arith.addf %12, %16 : vector<1x256xf32>
    %18 = vector.extract_strided_slice %3 {offsets = [3, 0], sizes = [1, 256], strides = [1, 1]} : vector<4x256xf32> to vector<1x256xf32>
    %c3 = arith.constant 3 : index
    %19 = memref.load %arg2[%c3] : memref<16xf32, #tpu.memory_space<smem>>
    %20 = vector.broadcast %19 : f32 to vector<1x256xf32>
    %21 = arith.mulf %18, %20 : vector<1x256xf32>
    %22 = arith.addf %17, %21 : vector<1x256xf32>
    %c0_3 = arith.constant 0 : index
    %23 = memref.load %arg3[%c0_3] : memref<4xf32, #tpu.memory_space<smem>>
    %24 = vector.broadcast %23 : f32 to vector<1x256xf32>
    %25 = arith.addf %22, %24 : vector<1x256xf32>
    %c0_4 = arith.constant 0 : index
    %c0_5 = arith.constant 0 : index
    %c0_6 = arith.constant 0 : index
    %26 = vector.load %arg4[%c0_4, %c0_5, %c0_6] : memref<1x4x256xf32, #tpu.memory_space<vmem>>, vector<1x1x256xf32>
    %27 = vector.shape_cast %26 : vector<1x1x256xf32> to vector<1x256xf32>
    %28 = vector.shape_cast %25 : vector<1x256xf32> to vector<1x1x256xf32>
    tpu.vector_store %arg4[%c0_4, %c0_5, %c0_6], %28 {strides = array<i32>} : memref<1x4x256xf32, #tpu.memory_space<vmem>>, vector<1x1x256xf32>,
    %29 = vector.extract_strided_slice %3 {offsets = [0, 0], sizes = [1, 256], strides = [1, 1]} : vector<4x256xf32> to vector<1x256xf32>
    %c4 = arith.constant 4 : index
    %30 = memref.load %arg2[%c4] : memref<16xf32, #tpu.memory_space<smem>>
    %31 = vector.broadcast %30 : f32 to vector<1x256xf32>
    %32 = arith.mulf %29, %31 : vector<1x256xf32>
    %33 = vector.extract_strided_slice %3 {offsets = [1, 0], sizes = [1, 256], strides = [1, 1]} : vector<4x256xf32> to vector<1x256xf32>
    %c5 = arith.constant 5 : index
    %34 = memref.load %arg2[%c5] : memref<16xf32, #tpu.memory_space<smem>>
    %35 = vector.broadcast %34 : f32 to vector<1x256xf32>
    %36 = arith.mulf %33, %35 : vector<1x256xf32>
    %37 = arith.addf %32, %36 : vector<1x256xf32>
    %38 = vector.extract_strided_slice %3 {offsets = [2, 0], sizes = [1, 256], strides = [1, 1]} : vector<4x256xf32> to vector<1x256xf32>
    %c6 = arith.constant 6 : index
    %39 = memref.load %arg2[%c6] : memref<16xf32, #tpu.memory_space<smem>>
    %40 = vector.broadcast %39 : f32 to vector<1x256xf32>
    %41 = arith.mulf %38, %40 : vector<1x256xf32>
    %42 = arith.addf %37, %41 : vector<1x256xf32>
    %43 = vector.extract_strided_slice %3 {offsets = [3, 0], sizes = [1, 256], strides = [1, 1]} : vector<4x256xf32> to vector<1x256xf32>
    %c7 = arith.constant 7 : index
    %44 = memref.load %arg2[%c7] : memref<16xf32, #tpu.memory_space<smem>>
    %45 = vector.broadcast %44 : f32 to vector<1x256xf32>
    %46 = arith.mulf %43, %45 : vector<1x256xf32>
    %47 = arith.addf %42, %46 : vector<1x256xf32>
    %c1_7 = arith.constant 1 : index
    %48 = memref.load %arg3[%c1_7] : memref<4xf32, #tpu.memory_space<smem>>
    %49 = vector.broadcast %48 : f32 to vector<1x256xf32>
    %50 = arith.addf %47, %49 : vector<1x256xf32>
    %c0_8 = arith.constant 0 : index
    %c1_9 = arith.constant 1 : index
    %c0_10 = arith.constant 0 : index
    %51 = vector.load %arg4[%c0_8, %c1_9, %c0_10] : memref<1x4x256xf32, #tpu.memory_space<vmem>>, vector<1x1x256xf32>
    %52 = vector.shape_cast %51 : vector<1x1x256xf32> to vector<1x256xf32>
    %53 = vector.shape_cast %50 : vector<1x256xf32> to vector<1x1x256xf32>
    tpu.vector_store %arg4[%c0_8, %c1_9, %c0_10], %53 {strides = array<i32>} : memref<1x4x256xf32, #tpu.memory_space<vmem>>, vector<1x1x256xf32>,
    %54 = vector.extract_strided_slice %3 {offsets = [0, 0], sizes = [1, 256], strides = [1, 1]} : vector<4x256xf32> to vector<1x256xf32>
    %c8 = arith.constant 8 : index
    %55 = memref.load %arg2[%c8] : memref<16xf32, #tpu.memory_space<smem>>
    %56 = vector.broadcast %55 : f32 to vector<1x256xf32>
    %57 = arith.mulf %54, %56 : vector<1x256xf32>
    %58 = vector.extract_strided_slice %3 {offsets = [1, 0], sizes = [1, 256], strides = [1, 1]} : vector<4x256xf32> to vector<1x256xf32>
    %c9 = arith.constant 9 : index
    %59 = memref.load %arg2[%c9] : memref<16xf32, #tpu.memory_space<smem>>
    %60 = vector.broadcast %59 : f32 to vector<1x256xf32>
    %61 = arith.mulf %58, %60 : vector<1x256xf32>
    %62 = arith.addf %57, %61 : vector<1x256xf32>
    %63 = vector.extract_strided_slice %3 {offsets = [2, 0], sizes = [1, 256], strides = [1, 1]} : vector<4x256xf32> to vector<1x256xf32>
    %c10 = arith.constant 10 : index
    %64 = memref.load %arg2[%c10] : memref<16xf32, #tpu.memory_space<smem>>
    %65 = vector.broadcast %64 : f32 to vector<1x256xf32>
    %66 = arith.mulf %63, %65 : vector<1x256xf32>
    %67 = arith.addf %62, %66 : vector<1x256xf32>
    %68 = vector.extract_strided_slice %3 {offsets = [3, 0], sizes = [1, 256], strides = [1, 1]} : vector<4x256xf32> to vector<1x256xf32>
    %c11 = arith.constant 11 : index
    %69 = memref.load %arg2[%c11] : memref<16xf32, #tpu.memory_space<smem>>
    %70 = vector.broadcast %69 : f32 to vector<1x256xf32>
    %71 = arith.mulf %68, %70 : vector<1x256xf32>
    %72 = arith.addf %67, %71 : vector<1x256xf32>
    %c2_11 = arith.constant 2 : index
    %73 = memref.load %arg3[%c2_11] : memref<4xf32, #tpu.memory_space<smem>>
    %74 = vector.broadcast %73 : f32 to vector<1x256xf32>
    %75 = arith.addf %72, %74 : vector<1x256xf32>
    %c0_12 = arith.constant 0 : index
    %c2_13 = arith.constant 2 : index
    %c0_14 = arith.constant 0 : index
    %76 = vector.load %arg4[%c0_12, %c2_13, %c0_14] : memref<1x4x256xf32, #tpu.memory_space<vmem>>, vector<1x1x256xf32>
    %77 = vector.shape_cast %76 : vector<1x1x256xf32> to vector<1x256xf32>
    %78 = vector.shape_cast %75 : vector<1x256xf32> to vector<1x1x256xf32>
    tpu.vector_store %arg4[%c0_12, %c2_13, %c0_14], %78 {strides = array<i32>} : memref<1x4x256xf32, #tpu.memory_space<vmem>>, vector<1x1x256xf32>,
    %79 = vector.extract_strided_slice %3 {offsets = [0, 0], sizes = [1, 256], strides = [1, 1]} : vector<4x256xf32> to vector<1x256xf32>
    %c12 = arith.constant 12 : index
    %80 = memref.load %arg2[%c12] : memref<16xf32, #tpu.memory_space<smem>>
    %81 = vector.broadcast %80 : f32 to vector<1x256xf32>
    %82 = arith.mulf %79, %81 : vector<1x256xf32>
    %83 = vector.extract_strided_slice %3 {offsets = [1, 0], sizes = [1, 256], strides = [1, 1]} : vector<4x256xf32> to vector<1x256xf32>
    %c13 = arith.constant 13 : index
    %84 = memref.load %arg2[%c13] : memref<16xf32, #tpu.memory_space<smem>>
    %85 = vector.broadcast %84 : f32 to vector<1x256xf32>
    %86 = arith.mulf %83, %85 : vector<1x256xf32>
    %87 = arith.addf %82, %86 : vector<1x256xf32>
    %88 = vector.extract_strided_slice %3 {offsets = [2, 0], sizes = [1, 256], strides = [1, 1]} : vector<4x256xf32> to vector<1x256xf32>
    %c14 = arith.constant 14 : index
    %89 = memref.load %arg2[%c14] : memref<16xf32, #tpu.memory_space<smem>>
    %90 = vector.broadcast %89 : f32 to vector<1x256xf32>
    %91 = arith.mulf %88, %90 : vector<1x256xf32>
    %92 = arith.addf %87, %91 : vector<1x256xf32>
    %93 = vector.extract_strided_slice %3 {offsets = [3, 0], sizes = [1, 256], strides = [1, 1]} : vector<4x256xf32> to vector<1x256xf32>
    %c15 = arith.constant 15 : index
    %94 = memref.load %arg2[%c15] : memref<16xf32, #tpu.memory_space<smem>>
    %95 = vector.broadcast %94 : f32 to vector<1x256xf32>
    %96 = arith.mulf %93, %95 : vector<1x256xf32>
    %97 = arith.addf %92, %96 : vector<1x256xf32>
    %c3_15 = arith.constant 3 : index
    %98 = memref.load %arg3[%c3_15] : memref<4xf32, #tpu.memory_space<smem>>
    %99 = vector.broadcast %98 : f32 to vector<1x256xf32>
    %100 = arith.addf %97, %99 : vector<1x256xf32>
    %c0_16 = arith.constant 0 : index
    %c3_17 = arith.constant 3 : index
    %c0_18 = arith.constant 0 : index
    %101 = vector.load %arg4[%c0_16, %c3_17, %c0_18] : memref<1x4x256xf32, #tpu.memory_space<vmem>>, vector<1x1x256xf32>
    %102 = vector.shape_cast %101 : vector<1x1x256xf32> to vector<1x256xf32>
    %103 = vector.shape_cast %100 : vector<1x256xf32> to vector<1x1x256xf32>
    tpu.vector_store %arg4[%c0_16, %c3_17, %c0_18], %103 {strides = array<i32>} : memref<1x4x256xf32, #tpu.memory_space<vmem>>, vector<1x1x256xf32>,
    return
  }
  func.func @transform_0(%arg0: i32) -> (i32, i32, i32) {
    %c0_i32 = arith.constant 0 : i32
    %c0_i32_0 = arith.constant 0 : i32
    %c0_i32_1 = arith.constant 0 : i32
    return %arg0, %c0_i32, %c0_i32_0 : i32, i32, i32
  }
  func.func @transform_1(%arg0: i32) -> i32 {
    %c0_i32 = arith.constant 0 : i32
    %c0_i32_0 = arith.constant 0 : i32
    return %c0_i32 : i32
  }
  func.func @transform_2(%arg0: i32) -> i32 {
    %c0_i32 = arith.constant 0 : i32
    %c0_i32_0 = arith.constant 0 : i32
    return %c0_i32 : i32
  }
  func.func @transform_3(%arg0: i32) -> (i32, i32, i32) {
    %c0_i32 = arith.constant 0 : i32
    %c0_i32_0 = arith.constant 0 : i32
    %c0_i32_1 = arith.constant 0 : i32
    return %arg0, %c0_i32, %c0_i32_0 : i32, i32, i32
  }
}

</mosaic_0001>

<bundles_post_ra>
// kernel: tpu_custom_call.1
= control target key start
LH: loop header
LB: loop body
LE: loop exit
PB: predicated region body
PF: predicated region fallthrough
CT: control target
= control target key end

     0   :  { %8 = vsyncpa [#allocation3], 0  ;;  %s1074_s0 = inlined_call_operand.hbm [shape: f32[2,4,256], index: 0, kind: input, shape index: {}]   ;;  %s1075_s1 = inlined_call_operand.vmem [shape: f32[16], index: 1, kind: input, shape index: {}]   ;;  %s1076_s2 = inlined_call_operand.vmem [shape: f32[4], index: 2, kind: input, shape index: {}]   ;;  %s1077_s3 = inlined_call_operand.hbm [shape: f32[2,4,256], index: 3, kind: output, shape index: {}]  }
   0x1   :  { %10 = vsyncpa [#allocation3 + $0x1], 0 }
   0x2   :  { %11 = vsyncpa [#allocation5], 0 }
   0x3   :  { %12 = vsyncpa [#allocation8], 0 }
   0x4   :  { %13 = vsyncpa [#allocation4], 0 }
   0x5   :  { %15 = vsyncpa [#allocation4 + $0x1], 0  ;;  %s800_s12 = smov 0   ;;  %s802_s13 = smov 0  }
   0x6   :  { %s804_s14 = smov 0   ;;  %s806_s15 = smov 0  }
   0x7 LB: > { %s821_s16 = sadd.s32 4294967295, %s773_s15   ;;  %s518_s17 = sadd.s32 4294967294, %s773_s15   ;;  %s773_s15 = sphi %s806_s15, %s1101_s15   ;;  %s769_s14 = sphi %s804_s14, %s1100_s14   ;;  %s765_s13 = sphi %s802_s13, %s1099_s13   ;;  %s761_s12 = sphi %s800_s12, %s1098_s12  }
   0x8   : > { %p41_p0 = scmp.ne.s32.totalorder %s765_s13, %s761_s12  ;;  %p1078_p1 = scmp.eq.s32.totalorder %s821_s16, 0 }
   0x9   : > { %p113_p3 = scmp.eq.s32.totalorder %s518_s17, 1  ;;  %p519_p5 = scmp.ge.s32.totalorder %s773_s15, 1 }
   0xa   : > { %p830_p4 = por %p1078_p1, %p41_p0  ;;  %p120_p7 = scmp.lt.s32.totalorder %s773_s15, 3 }
   0xb   : > { %p835_p6 = por %p113_p3, %p41_p0  ;;  %s133_s22 = sshll.u32 %s1075_s1, 4  ;;  %s134_s22 = int_to_ptr.vmem [resolvable:$true] %s133_s22 }
   0xc   : > { %s1081_s18 = scalar_select %p830_p4, 1, 0 }
   0xd   : > { %s1082_s19 = scalar_select %p835_p6, 1, 0 }
   0xe   : > { %p843_p8 = pnand %p519_p5, %p120_p7  ;;  %s144_s26 = sshll.u32 %s1076_s2, 4  ;;  %s145_s26 = int_to_ptr.vmem [resolvable:$true] %s144_s26 }
   0xf   : > { %s860_s28 = sadd.s32 1, %s773_s15   ;;  %s639_s30 = scalar_lea.vmem %s134_s22, 16 }
  0x10   : > { %s1083_s23 = scalar_select %p843_p8, 1, 0 }
  0x11   : > { %p583_p10 = pneg %p843_p8  ;;  %s25_s29 = ssub.s32 %s773_s15, %s860_s28 }
  0x12   : > { %p640_p12 = scmp.ne.s32.totalorder %s134_s22, %s639_s30  ;;  %p647_p5 = scmp.lt.s32.totalorder %s134_s22, %s134_s22 }
  0x13   : > { %p855_p11 = pnand %p583_p10, %p1078_p1  ;;  %p648_p7 = scmp.lt.s32.totalorder %s639_s30, %s639_s30 }
  0x15   : > { %p641_p13 = pneg %p855_p11  ;;  %p649_p9 = por %p648_p7, %p647_p5 }
  0x17   : > { %p642_p0 = pnand %p641_p13, %p640_p12 }
  0x19   : > { %p643_p3 = pneg %p642_p0 }
  0x1b   : > { %p650_p2 = pnand %p649_p9, %p643_p3 }
  0x1d   : > { %653 = shalt.err (!%p650_p2)
}
  0x1e   : > { %s775_s4 = smov [#allocation6]   ;;  %s654_s5 = scalar_lea.vmem %s145_s26, 16 }
  0x1f   : > { %586 = dma.vmem_to_smem (!%p855_p11), %s134_s22, 16, %s775_s4, [#allocation5]  }
  0x20   : > { %p655_p10 = scmp.ne.s32.totalorder %s145_s26, %s654_s5  ;;  %p662_p4 = scmp.lt.s32.totalorder %s145_s26, %s145_s26 }
  0x21   : > { %p663_p8 = scmp.lt.s32.totalorder %s654_s5, %s654_s5 }
  0x22   : > { %p657_p1 = pnand %p655_p10, %p641_p13 }
  0x23   : > { %p664_p12 = por %p663_p8, %p662_p4 }
  0x24   : > { %p658_p6 = pneg %p657_p1 }
  0x26   : > { %p665_p0 = pnand %p664_p12, %p658_p6 }
  0x28   : > { %668 = shalt.err (!%p665_p0)
}
  0x29   : > { %s776_s6 = smov [#allocation7]   ;;  %p26_p2 = scmp.eq.s32.totalorder %s25_s29, 0 }
  0x2a   : > { %589 = dma.vmem_to_smem (!%p855_p11), %s145_s26, 16, %s776_s6, [#allocation8]  }
  0x2b   : > { %s28_s7 = sadd.s32 1, %s769_s14  ;;  %p35_p1 = scmp.ne.s32.totalorder %s769_s14, %s765_s13 }
  0x2c   : > { %p36_p9 = scmp.eq.s32.totalorder %s773_s15, 0  ;;  %p1085_p6 = scmp.eq.s32.totalorder %s821_s16, 1 }
  0x2d   : > { %s875_s8 = scalar_select %p26_p2, %s769_s14, %s28_s7  }
  0x2e   : > { %p37_p4 = por %p36_p9, %p35_p1  ;;  %p879_p8 = por %p1085_p6, %p35_p1 }
  0x2f   : > { %p600_p13 = scmp.lt.s32.totalorder %s773_s15, 2  ;;  %s155_s10 = sand.u32 1, %s769_s14  }
  0x30   : > { %s523_s11 = sshll.u32 %s155_s10, 3  ;;  %s569_s17 = sshll.u32 %s773_s15, 7 }
  0x31   : > { %s889_s22 = scalar_lea.hbm %s1074_s0, %s569_s17  ;;  %s159_s24 = scalar_lea.vmem [#allocation2], %s523_s11 }
  0x32   : > { %s167_s25 = sshll.u32 %s159_s24, 4  ;;  %p893_p11 = pnand %p600_p13, %p37_p4  ;;  %s891_s25 = int_to_ptr.vmem [resolvable:$true] %s167_s25 }
  0x33   : > { %s156_s27 = scalar_lea.sflag [#allocation3], %s155_s10  ;;  %s669_s29 = scalar_lea.hbm %s889_s22, 128 }
  0x34   : > { %p670_p3 = scmp.ne.s32.totalorder %s889_s22, %s669_s29  ;;  %p671_p5 = pneg %p893_p11 }
  0x35   : > { %s674_s5 = scalar_lea.hbm %s1074_s0, 256  ;;  %p675_p12 = scmp.lt.u32.totalorder %s889_s22, %s1074_s0 }
  0x36   : > { %p672_p7 = pnand %p671_p5, %p670_p3  ;;  %p676_p0 = scmp.lt.u32.totalorder %s674_s5, %s669_s29 }
  0x37   : > { %p678_p1 = scmp.lt.u32.totalorder %s669_s29, %s889_s22 }
  0x38   : > { %p673_p10 = pneg %p672_p7  ;;  %p677_p2 = por %p676_p0, %p675_p12 }
  0x3a   : > { %p679_p9 = por %p678_p1, %p677_p2 }
  0x3c   : > { %p680_p4 = pnand %p679_p9, %p673_p10 }
  0x3e   : > { %683 = shalt.err (!%p680_p4)
}
  0x3f   : > { %s684_s10 = scalar_lea.vmem %s891_s25, 128  ;;  %s777_s11 = smov [#allocation2]  }
  0x40   : > { %p685_p6 = scmp.ne.s32.totalorder %s891_s25, %s684_s10  ;;  %s689_s17 = sshll.u32 %s777_s11, 4  ;;  %s690_s17 = int_to_ptr.vmem [resolvable:$false] %s689_s17 }
  0x41   : > { %s691_s20 = scalar_lea.vmem %s690_s17, 256  ;;  %p692_p7 = scmp.lt.s32.totalorder %s891_s25, %s690_s17 }
  0x42   : > { %p687_p13 = pnand %p685_p6, %p671_p5  ;;  %p693_p12 = scmp.lt.s32.totalorder %s691_s20, %s684_s10 }
  0x44   : > { %p688_p3 = pneg %p687_p13  ;;  %p694_p0 = por %p693_p12, %p692_p7 }
  0x46   : > { %p695_p2 = pnand %p694_p0, %p688_p3 }
  0x48   : > { %698 = shalt.err (!%p695_p2)
}
  0x49   : > { %593 = dma.hbm_to_vmem [thread:$0]  (!%p893_p11), %s889_s22, 128, %s891_s25, %s156_s27  }
  0x4a   : > { %p1088_p10 = scmp.ne.s32.totalorder %s1083_s23, 0 }
  0x4b   : > { %s925_s21 = sand.u32 (!%p1088_p10), 1, %s765_s13   ;;  %p1089_p5 = scmp.ne.s32.totalorder (!%p1088_p10), %s1081_s18, 0 }
  0x4c   : > { %176 = sbr.rel (%p1088_p10) target bundleno = 140 (0x8c), region = 32  ;;  %s527_s24 = sshll.u32 (!%p1088_p10), %s925_s21, 3 }
  0x4d   : > { %s179_s29 = scalar_lea.sflag (!%p1088_p10), [#allocation3], %s925_s21  ;;  %s182_s30 = scalar_lea.vmem (!%p1088_p10), [#allocation2], %s527_s24 }
  0x53   : > { %744 = dma.done.wait (%p1089_p5), %s179_s29, 128  }
  0x54   : > { %746 = vsyncadd (%p1089_p5), %s179_s29, 4294967168  ;;  %p1090_p11 = scmp.eq.s32.totalorder %s821_s16, 0 }
  0x56   : > { %748 = dma.done.wait (%p1090_p11), [#allocation5], 16   ;;  %p1091_p1 = pmov %p1090_p11 }
  0x58   : > { %750 = vsyncadd (%p1091_p1), [#allocation5], 4294967280  ;;  %p1092_p9 = pmov %p1091_p1 }
  0x59   : > { %p1093_p4 = pmov %p1091_p1 }
  0x5a   : > { %752 = dma.done.wait (%p1092_p9), [#allocation8], 16  }
  0x5b   : > { %754 = vsyncadd (%p1093_p4), [#allocation8], 4294967280 }
  0x5c   : > { %195 = sfence }
  0x5d   : > { %s216_s23 = sld [smem:[#allocation6]]  ;;  %v214_v0 = vld [vmem:[%s182_s30] sm:$0xff]  ;;  %s531_s22 = sld [smem:[#allocation6 + $0x1]]  ;;  %v778_v1 = vmov 1966171168   ;;  %v250_v3 = vlaneseq }
  0x5e   : > { %s533_s25 = sld [smem:[#allocation6 + $0x2]]  ;;  %v248_v2 = vunpack.c.l.s4 %v778_v1  ;;  %s535_s18 = sld [smem:[#allocation6 + $0x3]]  ;;  %v945_v4 = vmax.f32 %v214_v0, 0.0 }
  0x5f   : > { %s943_s26 = sld [smem:[#allocation7]]  ;;  %s537_s27 = sld [smem:[#allocation6 + $0x4]]  ;;  %v251_v6 = vshrl.u32 %v250_v3, 7  ;;  %vm1004_vm0 = vcmp.lt.s32.totalorder %v250_v3, 256 }
  0x60   : > { %s538_s4 = sld [smem:[#allocation6 + $0x5]]  ;;  %s947_s5 = sld [smem:[#allocation6 + $0x6]]  ;;  %v249_v5 = vunpack.c.0.s8 %v248_v2 }
  0x61   : > { %s949_s6 = sld [smem:[#allocation6 + $0x7]]  ;;  %s952_s7 = sld [smem:[#allocation6 + $0x8]] }
  0x62   : > { %s954_s10 = sld [smem:[#allocation6 + $0x9]]  ;;  %s956_s11 = sld [smem:[#allocation6 + $0xa]]  ;;  %v968_v15 = vsub.s32 %v249_v5, %v251_v6 }
  0x63   : > { %v217_v7 = vstv %s216_s23  ;;  %v220_v8 = vstv %s531_s22  ;;  %s958_s17 = sld [smem:[#allocation6 + $0xb]]  ;;  %s963_s20 = sld [smem:[#allocation7 + $0x1]] }
  0x64   : > { %v228_v9 = vstv %s533_s25  ;;  %v218_v10 = vmul.f32 %v217_v7, %v945_v4  ;;  %v221_v11 = vmul.f32 %v220_v8, %v945_v4  ;;  %v236_v13 = vstv %s535_s18  ;;  %s965_s29 = sld [smem:[#allocation6 + $0xc]]  ;;  %s972_s30 = sld [smem:[#allocation6 + $0xd]] }
  0x65   : > { %v229_v12 = vmul.f32 %v228_v9, %v945_v4  ;;  %v237_v14 = vmul.f32 %v236_v13, %v945_v4  ;;  %v268_v16 = vstv %s537_s27  ;;  %s974_s23 = sld [smem:[#allocation6 + $0xe]]  ;;  %v244_v23 = vstv %s943_s26  ;;  %s979_s22 = sld [smem:[#allocation6 + $0xf]] }
  0x66   : > { %v271_v17 = vstv %s538_s4  ;;  %v532_v18 = vrot.slane %v221_v11, 9  ;;  %v269_v20 = vmul.f32 %v268_v16, %v945_v4  ;;  %v279_v24 = vstv %s947_s5  ;;  %s987_s25 = sld [smem:[#allocation7 + $0x2]]  ;;  %s562_s18 = sld [smem:[#allocation7 + $0x3]] }
  0x67   : > { %v534_v19 = vrot.slane %v229_v12, 10  ;;  %v272_v21 = vmul.f32 %v271_v17, %v945_v4  ;;  %v536_v22 = vrot.slane %v237_v14, 11  ;;  %v287_v25 = vstv %s949_s6  ;;  %s213_s26 = scalar_lea.vmem [#allocation9], %s527_s24  ;;  %s570_s24 = sshll.u32 %s821_s16, 7 }
  0x68   : > { %v226_v26 = vadd.f32 %v532_v18, %v218_v10  ;;  %v280_v28 = vmul.f32 %v279_v24, %v945_v4  ;;  %v288_v29 = vmul.f32 %v287_v25, %v945_v4  ;;  %v316_v30 = vstv %s952_s7  ;;  %s426_s27 = sshll.u32 %s213_s26, 4  ;;  %s1028_s6 = scalar_lea.hbm %s1077_s3, %s570_s24  ;;  %s1030_s27 = int_to_ptr.vmem [resolvable:$true] %s426_s27 }
  0x69   : > { %v539_v27 = vrot.slane %v272_v21, 9  ;;  %v319_v31 = vstv %s954_s10  ;;  %v327_v32 = vstv %s956_s11  ;;  %v335_v33 = vstv %s958_s17  ;;  %s412_s16 = scalar_lea.sflag [#allocation4], %s925_s21  ;;  %s699_s7 = scalar_lea.vmem %s1030_s27, 128 }
  0x6a   : > { %v234_v34 = vadd.f32 %v534_v19, %v226_v26  ;;  %v541_v36 = vrot.slane %v280_v28, 10  ;;  %v543_v37 = vrot.slane %v288_v29, 11  ;;  %v317_v38 = vmul.f32 %v316_v30, %v945_v4  ;;  %p700_p6 = scmp.ne.s32.totalorder %s1030_s27, %s699_s7  ;;  %s779_s10 = smov [#allocation9]  }
  0x6b   : > { %v277_v35 = vadd.f32 %v539_v27, %v269_v20  ;;  %v320_v39 = vmul.f32 %v319_v31, %v945_v4  ;;  %v328_v40 = vmul.f32 %v327_v32, %v945_v4  ;;  %v336_v41 = vmul.f32 %v335_v33, %v945_v4  ;;  %s703_s11 = sshll.u32 %s779_s10, 4  ;;  %s704_s11 = int_to_ptr.vmem [resolvable:$false] %s703_s11 }
  0x6c   : > { %v242_v42 = vadd.f32 %v536_v22, %v234_v34  ;;  %v295_v44 = vstv %s963_s20  ;;  %v364_v45 = vstv %s965_s29  ;;  %v367_v52 = vstv %s972_s30  ;;  %p701_p13 = pnand %p700_p6, %p879_p8  ;;  %s705_s17 = scalar_lea.vmem %s704_s11, 256 }
  0x6d   : > { %v285_v43 = vadd.f32 %v541_v36, %v277_v35  ;;  %v548_v46 = vrot.slane %v320_v39, 9  ;;  %v550_v47 = vrot.slane %v328_v40, 10  ;;  %v552_v48 = vrot.slane %v336_v41, 11  ;;  %p706_p7 = scmp.lt.s32.totalorder %s1030_s27, %s704_s11  ;;  %p707_p12 = scmp.lt.s32.totalorder %s705_s17, %s699_s7 }
  0x6e   : > { %v365_v49 = vmul.f32 %v364_v45, %v945_v4  ;;  %v245_v50 = vadd.f32 %v244_v23, %v242_v42  ;;  %v375_v53 = vstv %s974_s23  ;;  %v368_v55 = vmul.f32 %v367_v52, %v945_v4  ;;  %p702_p3 = pneg %p701_p13 }
  0x6f   : > { %v293_v51 = vadd.f32 %v543_v37, %v285_v43  ;;  %v325_v54 = vadd.f32 %v548_v46, %v317_v38  ;;  %v376_v56 = vmul.f32 %v375_v53, %v945_v4  ;;  %v383_v57 = vstv %s979_s22  ;;  %p708_p0 = por %p707_p12, %p706_p7 }
  0x70   : > { %v253_v58 = vrot.slane %v245_v50, %v968_v15  ;;  %v384_v60 = vmul.f32 %v383_v57, %v945_v4  ;;  %v557_v63 = vrot.slane %v368_v55, 9  ;;  %v343_v5 = vstv %s987_s25 }
  0x71   : > { %v296_v59 = vadd.f32 %v295_v44, %v293_v51  ;;  %v333_v62 = vadd.f32 %v550_v47, %v325_v54  ;;  %v559_v0 = vrot.slane %v376_v56, 10  ;;  %v391_v10 = vstv %s562_s18  ;;  %p709_p2 = pnand %p708_p0, %p702_p3 }
  0x72   : > { %v260_v1 = vrot.slane %v253_v58, %v968_v15  ;;  %v373_v7 = vadd.f32 %v557_v63, %v365_v49  ;;  %v561_v8 = vrot.slane %v384_v60, 11 }
  0x73   : > { %v304_v2 = vrot.slane %v296_v59, %v968_v15  ;;  %v341_v6 = vadd.f32 %v552_v48, %v333_v62 }
  0x74   : > { %266 = vst.msk [vmem:[%s213_s26] ss:$4 sm:$0x3] %vm1004_vm0, %v260_v1  ;;  %v381_v9 = vadd.f32 %v559_v0, %v373_v7 }
  0x75   : > { %v311_v3 = vrot.slane %v304_v2, %v968_v15  ;;  %v344_v4 = vadd.f32 %v343_v5, %v341_v6 }
  0x76   : > { %v389_v12 = vadd.f32 %v561_v8, %v381_v9 }
  0x77   : > { %545 = vst.msk [vmem:[%s213_s26 + $0x1] ss:$4 sm:$0x3] %vm1004_vm0, %v311_v3  ;;  %v352_v11 = vrot.slane %v344_v4, %v968_v15 }
  0x78   : > { %v392_v14 = vadd.f32 %v391_v10, %v389_v12 }
  0x79   : > { %v359_v13 = vrot.slane %v352_v11, %v968_v15 }
  0x7a   : > { %v400_v16 = vrot.slane %v392_v14, %v968_v15 }
  0x7b   : > { %554 = vst.msk [vmem:[%s213_s26 + $0x2] ss:$4 sm:$0x3] %vm1004_vm0, %v359_v13 }
  0x7c   : > { %v407_v17 = vrot.slane %v400_v16, %v968_v15 }
  0x7e   : > { %563 = vst.msk [vmem:[%s213_s26 + $0x3] ss:$4 sm:$0x3] %vm1004_vm0, %v407_v17 }
  0x7f   : > { %712 = shalt.err (!%p709_p2)
}
  0x80   : > { %s713_s21 = scalar_lea.hbm %s1028_s6, 128  ;;  %s717_s30 = scalar_lea.hbm %s1077_s3, 256 }
  0x81   : > { %p714_p10 = scmp.ne.s32.totalorder %s1028_s6, %s713_s21  ;;  %p718_p1 = scmp.lt.u32.totalorder %s1028_s6, %s1077_s3 }
  0x82   : > { %p719_p9 = scmp.lt.u32.totalorder %s717_s30, %s713_s21  ;;  %p721_p6 = scmp.lt.u32.totalorder %s713_s21, %s1028_s6 }
  0x83   : > { %p715_p5 = pnand %p714_p10, %p879_p8 }
  0x84   : > { %p720_p4 = por %p719_p9, %p718_p1 }
  0x85   : > { %p716_p11 = pneg %p715_p5 }
  0x86   : > { %p722_p13 = por %p721_p6, %p720_p4 }
  0x88   : > { %p723_p3 = pnand %p722_p13, %p716_p11 }
  0x8a   : > { %726 = shalt.err (!%p723_p3)
}
  0x8b   : > { %581 = dma.vmem_to_hbm [thread:$0]  (%p879_p8), %s1030_s27, 128, %s1028_s6, %s412_s16  }
  0x8c PF: > { %s438_s25 = sand.u32 1, %s761_s12   ;;  %p1096_p7 = scmp.ne.s32.totalorder %s1082_s19, 0 }
  0x8d   : > { %p1097_p12 = scmp.ge.s32.totalorder %s773_s15, 2  ;;  %s439_s18 = scalar_lea.sflag [#allocation4], %s438_s25 }
  0x8f   : > { %p595_p0 = pnand %p1097_p12, %p1096_p7 }
  0x91   : > { %756 = dma.done.wait (!%p595_p0), %s439_s18, 128  }
  0x92   : > { %758 = vsyncadd (!%p595_p0), %s439_s18, 4294967168  ;;  %p18_p2 = scmp.ge.s32.totalorder %s860_s28, 4   ;;  %s1098_s12 = smov %s765_s13 }
  0x93   : > { %s1099_s13 = smov %s769_s14  ;;  %s1100_s14 = smov %s875_s8 }
  0x94   : > { %s1101_s15 = smov %s860_s28  ;;  %20 = sbr.rel (!%p18_p2) target bundleno = 7 (0x7), region = 89 }
  0x9b   :  { %444 = vsyncpa [#allocation3], 1 }
  0x9c   :  { %446 = vsyncpa [#allocation3 + $0x1], 1 }
  0x9d   :  { %447 = vsyncpa [#allocation4], 1 }
  0x9e   :  { %449 = vsyncpa [#allocation4 + $0x1], 1 }
  0x9f   :  { %450 = vsyncpa [#allocation5], 1 }
  0xa0   :  { %452 = vsyncpa [#allocation5 + $0x1], 1 }
  0xa1   :  { %453 = vsyncpa [#allocation8], 1 }

</bundles_post_ra>
